<compile_context>
chip_gen: v6e
topology: v6e:2x2x1
jax: 0.10.0
libtpu: 0.0.40
codegen_flags: <defaults>
</compile_context>

<pallas_src>
import functools

import jax
import jax.numpy as jnp
from jax.experimental import pallas as pl
from jax.experimental.pallas import tpu as pltpu

_LANE = 128
_SUBLANE = 8


def _round_up(x, m):
    return (x + m - 1) // m * m


def _vmem_capacity_bytes():
    """Physical per-core VMEM; conservative (v7x) fallback if unavailable."""
    try:
        info = pltpu.get_tpu_info()
        cap = getattr(info, "vmem_capacity_bytes", None)
        if cap:
            return int(cap)
    except Exception:
        pass
    return 64 << 20


def _choose_tile_b(B):
    """Sublane-aligned batch tile that divides B, else the whole batch."""
    for cand in (256, 128, 64, 32, 16, 8):
        if B % cand == 0:
            return cand
    return B


def _choose_tile_t(T, tile_b, Fp, budget_bytes):
    """Largest sublane-aligned time tile whose double-buffered f32 frame tile
    fits `budget_bytes`; capped at 512 rows (per-step overhead amortized by
    then) and at the sublane-padded time extent."""
    per_row = 2 * tile_b * Fp * 4              # 2 pipeline buffers, f32 frames
    fit = max(budget_bytes // per_row, _SUBLANE)
    tile_t = min(512, fit, _round_up(T, _SUBLANE))
    return max((tile_t // _SUBLANE) * _SUBLANE, _SUBLANE)


def _mos_predictor_kernel(frames_ref, w_ssl_ref, b_ssl_ref, w_head_ref,
                          b_head_ref, out_ref, acc_ref, *, inv_t):
    # frames_ref : (tile_b, tile_t, Fp) f32  framed-waveform tile (zero-padded)
    # w_ssl_ref  : (Fp, Dp)             bf16 synthetic SSL projection
    # b_ssl_ref  : (1, Dp)              f32  SSL bias (zero-padded)
    # w_head_ref : (Dp, Hp)             bf16 [mos | intell | zero-pad] heads
    # b_head_ref : (1, Hp)              f32
    # out_ref    : (tile_b, Hp)         f32  resident across the time axis
    # acc_ref    : (tile_b, Fp)         f32  running temporal frame sum
    t = pl.program_id(1)

    @pl.when(t == 0)
    def _init():
        acc_ref[...] = jnp.zeros_like(acc_ref)

    # Pure streaming reduction: partial temporal sum of the frame tile.
    # No per-tile MXU work, no reshapes, no (B*tile_t, Dp) intermediate.
    acc_ref[...] += jnp.sum(frames_ref[...], axis=1)

    @pl.when(t == pl.num_programs(1) - 1)
    def _finalize():
        # mean over time (padded frames are exactly zero; inv_t = 1/T_real),
        # then the SSL projection and both heads — valid because the stand-in
        # SSL is linear, so mean and projection commute.
        pooled_frames = (acc_ref[...] * inv_t).astype(jnp.bfloat16)
        x = (jnp.dot(pooled_frames, w_ssl_ref[...],
                     preferred_element_type=jnp.float32)
             + b_ssl_ref[...])                                  # (tile_b, Dp)
        out_ref[...] = (jnp.dot(x.astype(jnp.bfloat16), w_head_ref[...],
                                preferred_element_type=jnp.float32)
                        + b_head_ref[...])                      # (tile_b, Hp)


def mos_predictor_forward(wav, params, *, frame_size, num_frames, tile_t=None):
    """wav: (B, 1, L) float32.  Returns (x_mos (B,), x_intell (B,))."""
    B = wav.shape[0]
    T, F = num_frames, frame_size

    w_ssl, b_ssl = params["w_ssl"], params["b_ssl"]
    w_head, b_head = params["w_head"], params["b_head"]
    D = w_ssl.shape[1]

    # Zero-pad frame / feature / head axes to lane-dense widths (exact: padded
    # lanes are zero and the corresponding weight rows/cols are zero).
    Fp = _round_up(F, _LANE)
    Dp = _round_up(D, _LANE)
    Hp = _LANE
    w_ssl_p = jnp.zeros((Fp, Dp), jnp.bfloat16).at[:F, :D].set(
        w_ssl.astype(jnp.bfloat16))
    b_ssl_p = jnp.zeros((1, Dp), jnp.float32).at[:, :D].set(b_ssl)
    w_head_p = jnp.zeros((Dp, Hp), jnp.bfloat16).at[:D, :2].set(
        w_head.astype(jnp.bfloat16))
    b_head_p = jnp.zeros((1, Hp), jnp.float32).at[:, :2].set(b_head)

    vmem_cap = _vmem_capacity_bytes()
    tile_b = _choose_tile_b(B)
    if tile_t is None:
        tile_t = _choose_tile_t(T, tile_b, Fp, budget_bytes=vmem_cap // 4)
    assert tile_t % _SUBLANE == 0, "tile_t must be sublane (8) aligned"

    # Zero-pad time so any tile size works (padded frames sum to 0).
    Tp = _round_up(T, tile_t)
    num_t = Tp // tile_t
    num_b = B // tile_b

    # Glue (plain JAX): squeeze channel, frame the waveform.  No dtype cast —
    # f32 frames are streamed straight from HBM; padding only when needed.
    frames = jnp.squeeze(wav, axis=1).reshape(B, T, F)
    if (Tp, Fp) != (T, F):
        frames = jnp.pad(frames, ((0, 0), (0, Tp - T), (0, Fp - F)))

    # VMEM budget: double-buffered frame tile + resident weights/out/scratch.
    est = (2 * tile_b * tile_t * Fp * 4      # frames f32, 2 pipeline buffers
           + 2 * Fp * Dp * 2                 # w_ssl bf16
           + 2 * Dp * Hp * 2                 # w_head bf16
           + 2 * (Dp + Hp) * 4               # biases f32
           + 2 * tile_b * Hp * 4             # output block
           + tile_b * Fp * 4)                # accumulator scratch
    vmem_limit = int(min(max(2 * est, 16 << 20), (vmem_cap * 3) // 5))
    vmem_limit = max(vmem_limit, est + (1 << 20))

    kernel = functools.partial(_mos_predictor_kernel, inv_t=1.0 / T)
    out = pl.pallas_call(
        kernel,
        out_shape=jax.ShapeDtypeStruct((B, Hp), jnp.float32),
        grid_spec=pltpu.PrefetchScalarGridSpec(
            num_scalar_prefetch=0,
            grid=(num_b, num_t),                         # (parallel, reduce)
            in_specs=[
                pl.BlockSpec((tile_b, tile_t, Fp), lambda b, t: (b, t, 0)),
                pl.BlockSpec((Fp, Dp), lambda b, t: (0, 0)),
                pl.BlockSpec((1, Dp), lambda b, t: (0, 0)),
                pl.BlockSpec((Dp, Hp), lambda b, t: (0, 0)),
                pl.BlockSpec((1, Hp), lambda b, t: (0, 0)),
            ],
            out_specs=pl.BlockSpec((tile_b, Hp), lambda b, t: (b, 0)),
            scratch_shapes=[pltpu.VMEM((tile_b, Fp), jnp.float32)],
        ),
        compiler_params=pltpu.CompilerParams(
            dimension_semantics=("parallel", "arbitrary"),
            vmem_limit_bytes=vmem_limit,
        ),
    )(frames, w_ssl_p, b_ssl_p, w_head_p, b_head_p)

    x_mos = out[:, 0]      # x_mos.squeeze(1)
    x_intell = out[:, 1]   # x_intell.squeeze(1)
    return x_mos, x_intell


def init_params(key, frame_size, ssl_out_dim):
    k1, k2, k3 = jax.random.split(key, 3)
    F, D = frame_size, ssl_out_dim
    w_ssl = jax.random.normal(k1, (F, D), jnp.float32) * 0.02
    b_ssl = jnp.zeros((1, D), jnp.float32)
    # nn.Linear(D, 1) x2, stacked as (D, 2): column 0 = mos, column 1 = intell
    w_head = jax.random.normal(k2, (D, 2), jnp.float32) * (1.0 / jnp.sqrt(D))
    b_head = jax.random.normal(k3, (1, 2), jnp.float32) * 0.01
    return {"w_ssl": w_ssl, "b_ssl": b_ssl, "w_head": w_head, "b_head": b_head}


if __name__ == "__main__":
    B = 2            # batch
    F = 128          # samples per frame (synthetic SSL stand-in)
    T = 16           # number of frames (time steps of SSL features)
    L = T * F        # waveform length
    D = 32           # ssl_out_dim (hidden)

    key = jax.random.PRNGKey(0)
    kw, kp = jax.random.split(key)
    wav = jax.random.normal(kw, (B, 1, L), jnp.float32)
    params = init_params(kp, F, D)

    # tile_t=8 -> 2 time grid steps: exercises init / accumulate / finalize.
    x_mos, x_intell = mos_predictor_forward(wav, params, frame_size=F,
                                            num_frames=T, tile_t=8)
    jax.block_until_ready((x_mos, x_intell))

    # Reference in plain JAX, in the module's original order (project every
    # frame, then temporal mean, then heads) with the same bf16 weight
    # quantization the kernel uses.  The kernel hoists the mean in front of
    # the (linear) projection, which is mathematically identical.
    frames_f32 = jnp.squeeze(wav, 1).reshape(B, T, F)
    w_ssl_q = params["w_ssl"].astype(jnp.bfloat16).astype(jnp.float32)
    w_head_q = params["w_head"].astype(jnp.bfloat16).astype(jnp.float32)
    x_ref = frames_f32 @ w_ssl_q + params["b_ssl"]                # (B, T, D)
    pooled_ref = jnp.mean(x_ref, axis=1)                          # (B, D)
    out_ref = pooled_ref @ w_head_q + params["b_head"]            # (B, 2)

    assert x_mos.shape == (B,) and x_intell.shape == (B,)
    assert jnp.allclose(x_mos, out_ref[:, 0], atol=1e-3, rtol=1e-3)
    assert jnp.allclose(x_intell, out_ref[:, 1], atol=1e-3, rtol=1e-3)

    print("KERNEL_OK")
</pallas_src>

<mosaic_0001>
module attributes {stable_mosaic.version = 11 : i64} {
  func.func @_mos_predictor_kernel(%arg0: i32, %arg1: i32, %arg2: memref<2x8x128xf32, #tpu.memory_space<vmem>>, %arg3: memref<128x128xbf16, #tpu.memory_space<vmem>>, %arg4: memref<1x128xf32, #tpu.memory_space<vmem>>, %arg5: memref<128x128xbf16, #tpu.memory_space<vmem>>, %arg6: memref<1x128xf32, #tpu.memory_space<vmem>>, %arg7: memref<2x128xf32, #tpu.memory_space<vmem>>, %arg8: memref<2x128xf32, #tpu.memory_space<vmem>>) attributes {dimension_semantics = [#tpu.dimension_semantics<parallel>, #tpu.dimension_semantics<arbitrary>], iteration_bounds = array<i64: 1, 2>, scalar_prefetch = 0 : i64, scratch_operands = 1 : i64, tpu.core_type = #tpu.core_type<tc>, window_params = [{transform_indices = @transform_0, window_bounds = array<i64: 2, 8, 128>}, {pipeline_mode = #tpu.pipeline_mode<synchronous>, transform_indices = @transform_1, window_bounds = array<i64: 128, 128>}, {pipeline_mode = #tpu.pipeline_mode<synchronous>, transform_indices = @transform_2, window_bounds = array<i64: 1, 128>}, {pipeline_mode = #tpu.pipeline_mode<synchronous>, transform_indices = @transform_3, window_bounds = array<i64: 128, 128>}, {pipeline_mode = #tpu.pipeline_mode<synchronous>, transform_indices = @transform_4, window_bounds = array<i64: 1, 128>}, {transform_indices = @transform_5, window_bounds = array<i64: 2, 128>}]} {
    %c0_i32 = arith.constant 0 : i32
    %0 = arith.cmpi eq, %arg1, %c0_i32 : i32
    %1 = arith.extui %0 : i1 to i32
    %c0_i32_0 = arith.constant 0 : i32
    %2 = arith.cmpi ne, %1, %c0_i32_0 : i32
    scf.if %2 {
      %cst_8 = arith.constant 0.000000e+00 : f32
      %11 = vector.broadcast %cst_8 : f32 to vector<2x128xf32>
      %c0_9 = arith.constant 0 : index
      %c0_10 = arith.constant 0 : index
      %12 = vector.load %arg8[%c0_9, %c0_10] : memref<2x128xf32, #tpu.memory_space<vmem>>, vector<2x128xf32>
      tpu.vector_store %arg8[%c0_9, %c0_10], %11 {strides = array<i32>} : memref<2x128xf32, #tpu.memory_space<vmem>>, vector<2x128xf32>,
    } else {
    }
    %c0 = arith.constant 0 : index
    %c0_1 = arith.constant 0 : index
    %3 = vector.load %arg8[%c0, %c0_1] : memref<2x128xf32, #tpu.memory_space<vmem>>, vector<2x128xf32>
    %c0_2 = arith.constant 0 : index
    %c0_3 = arith.constant 0 : index
    %c0_4 = arith.constant 0 : index
    %4 = vector.load %arg2[%c0_2, %c0_3, %c0_4] : memref<2x8x128xf32, #tpu.memory_space<vmem>>, vector<2x8x128xf32>
    %cst = arith.constant dense<0.000000e+00> : vector<2x128xf32>
    %5 = vector.multi_reduction <add>, %4, %cst [1] : vector<2x8x128xf32> to vector<2x128xf32>
    %6 = arith.addf %3, %5 : vector<2x128xf32>
    %c0_5 = arith.constant 0 : index
    %c0_6 = arith.constant 0 : index
    %7 = vector.load %arg8[%c0_5, %c0_6] : memref<2x128xf32, #tpu.memory_space<vmem>>, vector<2x128xf32>
    tpu.vector_store %arg8[%c0_5, %c0_6], %6 {strides = array<i32>} : memref<2x128xf32, #tpu.memory_space<vmem>>, vector<2x128xf32>,
    %c1_i32 = arith.constant 1 : i32
    %8 = arith.cmpi eq, %arg1, %c1_i32 : i32
    %9 = arith.extui %8 : i1 to i32
    %c0_i32_7 = arith.constant 0 : i32
    %10 = arith.cmpi ne, %9, %c0_i32_7 : i32
    scf.if %10 {
      %c0_8 = arith.constant 0 : index
      %c0_9 = arith.constant 0 : index
      %11 = vector.load %arg8[%c0_8, %c0_9] : memref<2x128xf32, #tpu.memory_space<vmem>>, vector<2x128xf32>
      %cst_10 = arith.constant 6.250000e-02 : f32
      %12 = vector.broadcast %cst_10 : f32 to vector<2x128xf32>
      %13 = arith.mulf %11, %12 : vector<2x128xf32>
      %14 = arith.truncf %13 : vector<2x128xf32> to vector<2x128xbf16>
      %c0_11 = arith.constant 0 : index
      %c0_12 = arith.constant 0 : index
      %15 = vector.load %arg3[%c0_11, %c0_12] : memref<128x128xbf16, #tpu.memory_space<vmem>>, vector<128x128xbf16>
      %cst_13 = arith.constant dense<0.000000e+00> : vector<2x128xf32>
      %16 = tpu.matmul %14, %15, %cst_13 {dimension_numbers = #tpu.dot_dimension_numbers<[1], [0], [0], [1], [0, 0, 1, 1], [], []>} : vector<2x128xbf16>, vector<128x128xbf16>, vector<2x128xf32> -> vector<2x128xf32>
      %c0_14 = arith.constant 0 : index
      %c0_15 = arith.constant 0 : index
      %17 = vector.load %arg4[%c0_14, %c0_15] : memref<1x128xf32, #tpu.memory_space<vmem>>, vector<1x128xf32>
      %18 = vector.broadcast %17 : vector<1x128xf32> to vector<2x128xf32>
      %19 = arith.addf %16, %18 : vector<2x128xf32>
      %20 = arith.truncf %19 : vector<2x128xf32> to vector<2x128xbf16>
      %c0_16 = arith.constant 0 : index
      %c0_17 = arith.constant 0 : index
      %21 = vector.load %arg5[%c0_16, %c0_17] : memref<128x128xbf16, #tpu.memory_space<vmem>>, vector<128x128xbf16>
      %cst_18 = arith.constant dense<0.000000e+00> : vector<2x128xf32>
      %22 = tpu.matmul %20, %21, %cst_18 {dimension_numbers = #tpu.dot_dimension_numbers<[1], [0], [0], [1], [0, 0, 1, 1], [], []>} : vector<2x128xbf16>, vector<128x128xbf16>, vector<2x128xf32> -> vector<2x128xf32>
      %c0_19 = arith.constant 0 : index
      %c0_20 = arith.constant 0 : index
      %23 = vector.load %arg6[%c0_19, %c0_20] : memref<1x128xf32, #tpu.memory_space<vmem>>, vector<1x128xf32>
      %24 = vector.broadcast %23 : vector<1x128xf32> to vector<2x128xf32>
      %25 = arith.addf %22, %24 : vector<2x128xf32>
      %c0_21 = arith.constant 0 : index
      %c0_22 = arith.constant 0 : index
      %26 = vector.load %arg7[%c0_21, %c0_22] : memref<2x128xf32, #tpu.memory_space<vmem>>, vector<2x128xf32>
      tpu.vector_store %arg7[%c0_21, %c0_22], %25 {strides = array<i32>} : memref<2x128xf32, #tpu.memory_space<vmem>>, vector<2x128xf32>,
    } else {
    }
    return
  }
  func.func @transform_0(%arg0: i32, %arg1: i32) -> (i32, i32, i32) {
    %c0_i32 = arith.constant 0 : i32
    %c0_i32_0 = arith.constant 0 : i32
    return %arg0, %arg1, %c0_i32 : i32, i32, i32
  }
  func.func @transform_1(%arg0: i32, %arg1: i32) -> (i32, i32) {
    %c0_i32 = arith.constant 0 : i32
    %c0_i32_0 = arith.constant 0 : i32
    %c0_i32_1 = arith.constant 0 : i32
    return %c0_i32, %c0_i32_0 : i32, i32
  }
  func.func @transform_2(%arg0: i32, %arg1: i32) -> (i32, i32) {
    %c0_i32 = arith.constant 0 : i32
    %c0_i32_0 = arith.constant 0 : i32
    %c0_i32_1 = arith.constant 0 : i32
    return %c0_i32, %c0_i32_0 : i32, i32
  }
  func.func @transform_3(%arg0: i32, %arg1: i32) -> (i32, i32) {
    %c0_i32 = arith.constant 0 : i32
    %c0_i32_0 = arith.constant 0 : i32
    %c0_i32_1 = arith.constant 0 : i32
    return %c0_i32, %c0_i32_0 : i32, i32
  }
  func.func @transform_4(%arg0: i32, %arg1: i32) -> (i32, i32) {
    %c0_i32 = arith.constant 0 : i32
    %c0_i32_0 = arith.constant 0 : i32
    %c0_i32_1 = arith.constant 0 : i32
    return %c0_i32, %c0_i32_0 : i32, i32
  }
  func.func @transform_5(%arg0: i32, %arg1: i32) -> (i32, i32) {
    %c0_i32 = arith.constant 0 : i32
    %c0_i32_0 = arith.constant 0 : i32
    return %arg0, %c0_i32 : i32, i32
  }
}

</mosaic_0001>

<bundles_post_ra>
// kernel: tpu_custom_call.1
= control target key start
LH: loop header
LB: loop body
LE: loop exit
PB: predicated region body
PF: predicated region fallthrough
CT: control target
= control target key end

     0   :  { %s1192_s0 = inlined_call_operand.hbm [shape: f32[2,16,128], index: 0, kind: input, shape index: {}]   ;;  %s1193_s1 = inlined_call_operand.hbm [shape: bf16[128,128], index: 1, kind: input, shape index: {}]   ;;  %s1194_s2 = inlined_call_operand.vmem [shape: f32[1,128], index: 2, kind: input, shape index: {}]   ;;  %s1195_s3 = inlined_call_operand.hbm [shape: bf16[128,128], index: 3, kind: input, shape index: {}]   ;;  %s1196_s4 = inlined_call_operand.vmem [shape: f32[1,128], index: 4, kind: input, shape index: {}]   ;;  %s1197_s5 = inlined_call_operand.hbm [shape: f32[2,128], index: 5, kind: output, shape index: {}]  }
   0x1   :  { %1201 = sst [smem:[#allocation13_spill]] %s1193_s1 }
   0x2   :  { %10 = vsyncpa [#allocation4], 0 }
   0x3   :  { %12 = vsyncpa [#allocation4 + $0x1], 0 }
   0x4   :  { %13 = vsyncpa [#allocation7], 0 }
   0x5   :  { %14 = vsyncpa [#allocation5], 0  ;;  %s1038_s18 = smov 0   ;;  %s1040_s19 = smov 0  }
   0x6   :  { %s1042_s20 = smov 0   ;;  %s1044_s21 = smov 0  }
   0x7   :  { %s1046_s22 = smov 0   ;;  %s1048_s23 = smov 0  }
   0x8 LB: > { %s1200_s24 = sadd.s32 4294967295, %s994_s23   ;;  %p48_p0 = scmp.ne.s32.totalorder %s982_s20, %s978_s19  ;;  %s994_s23 = sphi %s1048_s23, %s20_s23   ;;  %s990_s22 = sphi %s1046_s22, %s1215_s22   ;;  %s986_s21 = sphi %s1044_s21, %s1214_s21   ;;  %s982_s20 = sphi %s1042_s20, %s1213_s20   ;;  %s978_s19 = sphi %s1040_s19, %s1212_s19   ;;  %s974_s18 = sphi %s1038_s18, %s1211_s18  }
   0x9   : > { %p49_p1 = scmp.eq.s32.totalorder %s994_s23, 0  ;;  %p54_p2 = scmp.ne.s32.totalorder %s978_s19, %s974_s18 }
   0xa   : > { %p1073_p3 = scmp.eq.s32.totalorder %s1200_s24, 0  ;;  %p633_p4 = scmp.ge.s32.totalorder %s994_s23, 1 }
   0xb   : > { %p50_p5 = por %p49_p1, %p48_p0  ;;  %p175_p6 = scmp.lt.s32.totalorder %s994_s23, 3 }
   0xc   : > { %s1202_s25 = scalar_select %p1073_p3, 1, 0 }
   0xd   : > { %p1081_p7 = por %p1073_p3, %p54_p2  ;;  %p1085_p8 = pnand %p633_p4, %p175_p6 }
   0xe   : > { %s996_s28 = smov [#allocation6]   ;;  %p752_p11 = scmp.lt.s32.totalorder %s994_s23, 2 }
   0xf   : > { %s187_s29 = sshll.u32 %s996_s28, 4  ;;  %p739_p9 = pneg %p1085_p8  ;;  %s188_s29 = int_to_ptr.vmem [resolvable:$true] %s187_s29 }
  0x10   : > { %p1098_p12 = pnand %p752_p11, %p50_p5  ;;  %s843_s7 = scalar_lea.vmem %s188_s29, 1024 }
  0x11   : > { %p1093_p10 = pnand %p739_p9, %p1073_p3  ;;  %p844_p0 = scmp.ne.s32.totalorder %s188_s29, %s843_s7 }
  0x12   : > { %p851_p4 = scmp.lt.s32.totalorder %s188_s29, %s188_s29  ;;  %p852_p6 = scmp.lt.s32.totalorder %s843_s7, %s843_s7 }
  0x13   : > { %p834_p13 = pneg %p1093_p10 }
  0x14   : > { %p853_p9 = por %p852_p6, %p851_p4 }
  0x15   : > { %p846_p1 = pnand %p844_p0, %p834_p13 }
  0x17   : > { %p847_p2 = pneg %p846_p1 }
  0x19   : > { %p854_p3 = pnand %p853_p9, %p847_p2 }
  0x1b   : > { %857 = shalt.err (!%p854_p3)
}
  0x1c   : > { %s997_s8 = smov 64   ;;  %s998_s9 = smov 4  }
  0x1d   : > { %s1207_s1 = sld [smem:[#allocation13_spill]]  ;;  %s999_s12 = smov [#allocation8]  }
  0x1e   : > { %s203_s13 = sshll.u32 %s999_s12, 4  ;;  %s204_s13 = int_to_ptr.vmem [resolvable:$true] %s203_s13 }
  0x1f   : > { %s869_s14 = scalar_lea.vmem %s204_s13, 1024  ;;  %p877_p1 = scmp.lt.s32.totalorder %s204_s13, %s204_s13 }
  0x20   : > { %p870_p5 = scmp.ne.s32.totalorder %s204_s13, %s869_s14  ;;  %p878_p3 = scmp.lt.s32.totalorder %s869_s14, %s869_s14 }
  0x22   : > { %p872_p11 = pnand %p870_p5, %p834_p13  ;;  %p879_p2 = por %p878_p3, %p877_p1 }
  0x23   : > { %742 = dma.hbm_to_vmem [thread:$0]  (!%p1093_p10), %s1207_s1, 1024, %s188_s29, [#allocation7], %s997_s8, %s997_s8, %s998_s9  }
  0x24   : > { %p873_p0 = pneg %p872_p11 }
  0x26   : > { %p880_p4 = pnand %p879_p2, %p873_p0 }
  0x28   : > { %883 = shalt.err (!%p880_p4)
}
  0x29   : > { %745 = dma.hbm_to_vmem [thread:$0]  (!%p1093_p10), %s1195_s3, 1024, %s204_s13, [#allocation7], %s997_s8, %s997_s8, %s998_s9  }
  0x2a   : > { %s29_s17 = sadd.s32 1, %s990_s22  ;;  %s41_s18 = sadd.s32 1, %s982_s20 }
  0x2b   : > { %p30_p13 = scmp.ge.s32.totalorder %s29_s17, 2  ;;  %s220_s28 = sand.u32 1, %s982_s20  }
  0x2c   : > { %s637_s29 = sshll.u32 %s220_s28, 4  ;;  %s638_s30 = sshll.u32 %s990_s22, 7 }
  0x2d   : > { %s1217_s17 = smov (%p30_p13, %s29_s17), 0  ;;  %s232_s12 = scalar_lea.hbm %s1192_s0, %s638_s30 }
  0x2e   : > { %s37_s7 = ssub.s32 %s990_s22, %s1217_s17  ;;  %s224_s14 = scalar_lea.vmem [#allocation3], %s637_s29 }
  0x2f   : > { %p39_p6 = scmp.eq.s32.totalorder %s37_s7, 0  ;;  %s233_s15 = sshll.u32 %s224_s14, 4  ;;  %s234_s15 = int_to_ptr.vmem [resolvable:$true] %s233_s15 }
  0x30   : > { %s221_s9 = scalar_lea.sflag [#allocation4], %s220_s28  ;;  %p886_p10 = pneg %p1098_p12 }
  0x31   : > { %s1132_s8 = scalar_select %p39_p6, %s982_s20, %s41_s18  }
  0x32   : > { %s897_s13 = scalar_lea.vmem %s234_s15, 256  ;;  %s1000_s16 = smov [#allocation3]  }
  0x33   : > { %p898_p9 = scmp.ne.s32.totalorder %s234_s15, %s897_s13  ;;  %s902_s24 = sshll.u32 %s1000_s16, 4  ;;  %s903_s24 = int_to_ptr.vmem [resolvable:$false] %s902_s24 }
  0x34   : > { %s904_s1 = scalar_lea.vmem %s903_s24, 512  ;;  %p905_p0 = scmp.lt.s32.totalorder %s234_s15, %s903_s24 }
  0x35   : > { %p900_p5 = pnand %p898_p9, %p886_p10  ;;  %p906_p1 = scmp.lt.s32.totalorder %s904_s1, %s897_s13 }
  0x37   : > { %p901_p11 = pneg %p900_p5  ;;  %p907_p3 = por %p906_p1, %p905_p0 }
  0x39   : > { %p908_p2 = pnand %p907_p3, %p901_p11 }
  0x3b   : > { %911 = shalt.err (!%p908_p2)
}
  0x3c   : > { %s1001_s29 = smov 256   ;;  %s1002_s18 = smov 128  }
  0x3d   : > { %s1003_s30 = smov 8   ;;  %245 = sbr.rel (%p1085_p8) target bundleno = 540 (0x21c), region = 40 }
  0x3e   : > { %749 = dma.hbm_to_vmem [thread:$0]  (!%p1098_p12), %s232_s12, 256, %s234_s15, %s221_s9, %s1001_s29, %s1002_s18, %s1003_s30  }
  0x3f   : > { %s247_s28 = sand.u32 (!%p1085_p8), 1, %s978_s19  }
  0x40   : > { %s640_s7 = sshll.u32 (!%p1085_p8), %s247_s28, 4  ;;  %s248_s10 = scalar_lea.sflag (!%p1085_p8), [#allocation4], %s247_s28 }
  0x41   : > { %s251_s11 = scalar_lea.vmem (!%p1085_p8), [#allocation3], %s640_s7 }
  0x42   : > { %961 = dma.done.wait (%p1081_p7), %s248_s10, 256  }
  0x43   : > { %963 = vsyncadd (%p1081_p7), %s248_s10, 4294967040  ;;  %p1208_p4 = scmp.ne.s32.totalorder %s1202_s25, 0 }
  0x45   : > { %965 = dma.done.wait (%p1208_p4), [#allocation7], 2048  }
  0x46   : > { %967 = vsyncadd (%p1208_p4), [#allocation7], 4294965248  ;;  %p643_p12 = scmp.ne.s32.totalorder %s986_s21, 0 }
  0x48   : > { %286 = sbr.rel (%p643_p12) target bundleno = 79 (0x4f), region = 56 }
  0x4d   : > { %v1004_v0 = vmov 0.0  }
  0x4e   : > { %287 = vst [vmem:[#allocation2] sm:$0x3] %v1004_v0 }
  0x4f PF: > { %v289_v1 = vld [vmem:[%s251_s11] sm:$0xff]  ;;  %v290_v2 = vld [vmem:[%s251_s11 + $0x8] sm:$0xff]  ;;  %vm305_vm0 = vcmask 1041409   ;;  %p644_p7 = scmp.ne.s32.totalorder %s986_s21, 1 }
  0x50   : > { %v291_v3 = vrot.slane %v289_v1, 4  ;;  %v297_v4 = vrot.slane %v290_v2, 4 }
  0x52   : > { %v292_v5 = vadd.f32 %v291_v3, %v289_v1  ;;  %v298_v6 = vadd.f32 %v297_v4, %v290_v2 }
  0x54   : > { %v293_v7 = vrot.slane %v292_v5, 2  ;;  %v299_v8 = vrot.slane %v298_v6, 2 }
  0x55   : > { %v288_v13 = vld [vmem:[#allocation2] sm:$0x3] }
  0x56   : > { %v294_v9 = vadd.f32 %v293_v7, %v292_v5  ;;  %v300_v10 = vadd.f32 %v299_v8, %v298_v6 }
  0x58   : > { %v295_v11 = vrot.slane %v294_v9, 1  ;;  %v301_v12 = vrot.slane %v300_v10, 1 }
  0x5a   : > { %v296_v14 = vadd.f32 %v295_v11, %v294_v9  ;;  %v302_v15 = vadd.f32 %v301_v12, %v300_v10 }
  0x5b   : > { %313 = sbr.rel (%p644_p7) target bundleno = 525 (0x20d), region = 60 }
  0x5c   : > { %v306_v16 = vsel %vm305_vm0, %v302_v15, %v296_v14 }
  0x5d   : > { %v308_v17 = vadd.f32 %v306_v16, %v288_v13 }
  0x5f   : > { %309 = vst [vmem:[#allocation2] sm:$0x3] %v308_v17 }
  0x60   : > { %v816_v18 = vld [vmem:[#allocation6 + $0x38] sm:$0xff]   ;;  %v1005_v19 = vmov 0.0   ;;  %v817_v20 = vld [vmem:[#allocation6 + $0x30] sm:$0xff]   ;;  %vm1006_vm1 = vmmov 0   ;;  %v818_v21 = vld [vmem:[#allocation6 + $0x28] sm:$0xff]  }
  0x61   : > { %685 = vmatprep.subr.bf16.mxu0 %v1005_v19  ;;  %705 = vmatprep.subr.bf16.mxu1 %v1005_v19  ;;  %v824_v22 = vld [vmem:[#allocation8 + $0x38] sm:$0xff]   ;;  %v819_v23 = vld [vmem:[#allocation6 + $0x20] sm:$0xff]   ;;  %v825_v24 = vld [vmem:[#allocation8 + $0x30] sm:$0xff]  }
  0x62   : > { %686 = vmatpush3.bf16.msra.mxu0 %v816_v18  ;;  %701 = vmatprep.mubr.msk.bf16.mxu0 %vm1006_vm1, %v1005_v19  ;;  %v820_v25 = vld [vmem:[#allocation6 + $0x18] sm:$0xff]   ;;  %v826_v26 = vld [vmem:[#allocation8 + $0x28] sm:$0xff]   ;;  %v821_v27 = vld [vmem:[#allocation6 + $0x10] sm:$0xff]  }
  0x63   : > { %687 = vmatprep.subr.bf16.mxu0 %v1005_v19  ;;  %721 = vmatprep.mubr.msk.bf16.mxu1 %vm1006_vm1, %v1005_v19  ;;  %v827_v28 = vld [vmem:[#allocation8 + $0x20] sm:$0xff]   ;;  %v822_v29 = vld [vmem:[#allocation6 + $0x8] sm:$0xff]   ;;  %v828_v31 = vld [vmem:[#allocation8 + $0x18] sm:$0xff]  }
  0x64   : > { %706 = vmatpush3.bf16.msra.mxu1 %v824_v22  ;;  %v823_v33 = vld [vmem:[#allocation6] sm:$0xff]   ;;  %v829_v34 = vld [vmem:[#allocation8 + $0x10] sm:$0xff]   ;;  %v830_v36 = vld [vmem:[#allocation8 + $0x8] sm:$0xff]  }
  0x65   : > { %707 = vmatprep.subr.bf16.mxu1 %v1005_v19  ;;  %v831_v37 = vld [vmem:[#allocation8] sm:$0xff]   ;;  %v645_v38 = vld [vmem:[%s1194_s2] ss:$0 sm:$0xff] }
  0x66   : > { %688 = vmatpush3.bf16.msra.mxu0 %v817_v20  ;;  %v314_v30 = vld [vmem:[#allocation2] sm:$0x3] }
  0x67   : > { %689 = vmatprep.subr.bf16.mxu0 %v1005_v19  ;;  %v315_v32 = vmul.f32 0.0625, %v314_v30  ;;  %v654_v45 = vld [vmem:[%s1196_s4] ss:$0 sm:$0xff] }
  0x68   : > { %708 = vmatpush3.bf16.msra.mxu1 %v825_v24 }
  0x69   : > { %709 = vmatprep.subr.bf16.mxu1 %v1005_v19  ;;  %v316_v35 = vpack.c.bf16 %v315_v32, %v315_v32 }
  0x6a   : > { %690 = vmatpush3.bf16.msra.mxu0 %v818_v21 }
  0x6b   : > { %691 = vmatprep.subr.bf16.mxu0 %v1005_v19 }
  0x6c   : > { %710 = vmatpush3.bf16.msra.mxu1 %v826_v26 }
  0x6d   : > { %711 = vmatprep.subr.bf16.mxu1 %v1005_v19 }
  0x6e   : > { %692 = vmatpush3.bf16.msra.mxu0 %v819_v23 }
  0x6f   : > { %693 = vmatprep.subr.bf16.mxu0 %v1005_v19 }
  0x70   : > { %712 = vmatpush3.bf16.msra.mxu1 %v827_v28 }
  0x71   : > { %713 = vmatprep.subr.bf16.mxu1 %v1005_v19 }
  0x72   : > { %694 = vmatpush3.bf16.msra.mxu0 %v820_v25 }
  0x73   : > { %695 = vmatprep.subr.bf16.mxu0 %v1005_v19 }
  0x74   : > { %714 = vmatpush3.bf16.msra.mxu1 %v828_v31 }
  0x75   : > { %715 = vmatprep.subr.bf16.mxu1 %v1005_v19 }
  0x76   : > { %696 = vmatpush3.bf16.msra.mxu0 %v821_v27 }
  0x77   : > { %697 = vmatprep.subr.bf16.mxu0 %v1005_v19 }
  0x78   : > { %716 = vmatpush3.bf16.msra.mxu1 %v829_v34 }
  0x79   : > { %717 = vmatprep.subr.bf16.mxu1 %v1005_v19 }
  0x7a   : > { %698 = vmatpush3.bf16.msra.mxu0 %v822_v29 }
  0x7b   : > { %699 = vmatprep.subr.bf16.mxu0 %v1005_v19 }
  0x7c   : > { %718 = vmatpush3.bf16.msra.mxu1 %v830_v36 }
  0x7d   : > { %719 = vmatprep.subr.bf16.mxu1 %v1005_v19 }
  0x7e   : > { %700 = vmatpush3.bf16.msra.mxu0 %v823_v33 }
  0x80   : > { %720 = vmatpush3.bf16.msra.mxu1 %v831_v37 }
  0x81   : > { %702 = vmatmul.mubr.bf16.vlgmr.msra.gmra.mxu0 %v316_v35 }
 0x141   : > { %v422_v39 = vpop.f32.mrf.mxu0 }
 0x142   : > { %v423_v40 = vadd.f32 %v645_v38, %v422_v39 }
 0x143   : > { %v703_v41 = vpop.f32.mrf.mxu0 }
 0x144   : > { %v428_v42 = vpack.c.bf16 %v423_v40, %v423_v40 }
 0x145   : > { %v425_v43 = vpop.f32.mrf.mxu0 }
 0x146   : > { %722 = vmatmul.mubr.bf16.vlgmr.msra.gmra.mxu1 %v428_v42 }
 0x147   : > { %v704_v44 = vpop.f32.mrf.mxu0 }
 0x206   : > { %v534_v46 = vpop.f32.mrf.mxu1 }
 0x207   : > { %v535_v47 = vadd.f32 %v654_v45, %v534_v46 }
 0x208   : > { %v723_v48 = vpop.f32.mrf.mxu1 }
 0x209   : > { %540 = vst [vmem:[#allocation9] sm:$0x3] %v535_v47 }
 0x20a   : > { %v537_v49 = vpop.f32.mrf.mxu1 }
 0x20c   : > { %v724_v50 = vpop.f32.mrf.mxu1 }
 0x20d PF: > { %s1209_s26 = sadd.s32 4294967295, %s994_s23   ;;  %s1007_s6 = smov [#allocation9]  }
 0x20e   : > { %p1159_p8 = scmp.eq.s32.totalorder %s1209_s26, 1  ;;  %s550_s12 = sshll.u32 %s1007_s6, 4  ;;  %s551_s12 = int_to_ptr.vmem [resolvable:$true] %s550_s12 }
 0x20f   : > { %s912_s14 = scalar_lea.vmem %s551_s12, 32  ;;  %p919_p9 = scmp.lt.s32.totalorder %s551_s12, %s551_s12 }
 0x210   : > { %p913_p13 = scmp.ne.s32.totalorder %s551_s12, %s912_s14  ;;  %p920_p5 = scmp.lt.s32.totalorder %s912_s14, %s912_s14 }
 0x212   : > { %p914_p6 = pnand %p913_p13, %p1159_p8  ;;  %p921_p11 = por %p920_p5, %p919_p9 }
 0x214   : > { %p915_p10 = pneg %p914_p6 }
 0x216   : > { %p922_p0 = pnand %p921_p11, %p915_p10 }
 0x218   : > { %925 = shalt.err (!%p922_p0)
}
 0x219   : > { %736 = dma.vmem_to_hbm [thread:$0]  (%p1159_p8), %s551_s12, 32, %s1197_s5, [#allocation5]  }
 0x21a   : > { %969 = dma.done.wait (%p1159_p8), [#allocation5], 32  }
 0x21b   : > { %971 = vsyncadd (%p1159_p8), [#allocation5], 4294967264 }
 0x21c PF: > { %s20_s23 = sadd.s32 1, %s994_s23   ;;  %s1211_s18 = smov %s978_s19 }
 0x21d   : > { %p17_p1 = scmp.ge.s32.totalorder %s20_s23, 4   ;;  %s1212_s19 = smov %s982_s20 }
 0x21e   : > { %s1213_s20 = smov %s1132_s8  ;;  %s1214_s21 = smov %s990_s22 }
 0x21f   : > { %s1215_s22 = smov %s1217_s17  ;;  %19 = sbr.rel (!%p17_p1) target bundleno = 8 (0x8), region = 94 }
 0x224   :  { %563 = vsyncpa [#allocation4], 1 }
 0x225   :  { %565 = vsyncpa [#allocation4 + $0x1], 1 }
 0x226   :  { %566 = vsyncpa [#allocation7], 1 }
 0x227   :  { %567 = vsyncpa [#allocation5], 1 }
 0x228   :  { %569 = vsyncpa [#allocation5 + $0x1], 1 }

</bundles_post_ra>
